<compile_context>
chip_gen: v5e
topology: v5e:2x2
jax: 0.10.0
libtpu: 0.0.40
codegen_flags: <defaults>
</compile_context>

<pallas_src>
import numpy as np
import jax
import jax.numpy as jnp
from jax import lax
from jax.experimental import pallas as pl
from jax.experimental.pallas import tpu as pltpu


def _round_up(x: int, m: int) -> int:
    return ((x + m - 1) // m) * m


# ---------------------------------------------------------------------------
# 1) Module-exact scalar path: one point, one splat -> 0-d scalar.
#    (Overhead-bound by design; kept minimal & gridless.)
# ---------------------------------------------------------------------------
def _splat_scalar_kernel(params_ref, pc_ref, out_ref):
    # params_ref: SMEM (2,)  = [log_scale, amplitude]
    # pc_ref:     VMEM (2,D) = [point ; center]   (single stacked DMA)
    diff = pc_ref[0:1, :] - pc_ref[1:2, :]                 # (1, D)  VPU
    sq_dist = jnp.sum(diff * diff, keepdims=True)          # (1, 1)  XLU reduce
    scale = jnp.exp(params_ref[0])                         # scalar
    inv = 1.0 / (scale + 1e-8)                             # sqrt eliminated
    gate = 1.0 / (1.0 + jnp.exp(-params_ref[1]))           # sigmoid(amplitude)
    out_ref[...] = (gate * jnp.exp(-0.5 * sq_dist * (inv * inv))).astype(out_ref.dtype)


def standard_gaussian_splat(point, center, log_scale, amplitude):
    """Exact StandardGaussianSplat.forward: returns a 0-d scalar."""
    p = jnp.asarray(point, jnp.float32).reshape(-1)
    c = jnp.asarray(center, jnp.float32).reshape(-1)
    d = p.shape[0]
    pc = jnp.stack([p, c], axis=0)                                           # (2, D)
    params = jnp.stack([jnp.asarray(log_scale, jnp.float32).reshape(()),
                        jnp.asarray(amplitude, jnp.float32).reshape(())])    # (2,)

    out = pl.pallas_call(
        _splat_scalar_kernel,
        out_shape=jax.ShapeDtypeStruct((1, 1), jnp.float32),
        in_specs=[
            pl.BlockSpec(memory_space=pltpu.MemorySpace.SMEM),   # [log_scale, amplitude]
            pl.BlockSpec(memory_space=pltpu.MemorySpace.VMEM),   # stacked point/center
        ],
        out_specs=pl.BlockSpec(memory_space=pltpu.MemorySpace.VMEM),
        cost_estimate=pl.CostEstimate(flops=3 * d + 8, transcendentals=3,
                                      bytes_accessed=4 * (2 * d + 3)),
    )(params, pc)
    return out[0, 0]


# ---------------------------------------------------------------------------
# 2) Batched performance path: N points x M splats in one pallas_call.
# ---------------------------------------------------------------------------
_NT_DIMS = (((1,), (1,)), ((), ()))   # contract last dim of both operands: A @ B^T


def _splats_on_lanes_kernel(p_ref, c_ref, pn_ref, cpack_ref, out_ref):
    """out[point, splat]: points on sublanes, splats on lanes.

    p_ref:     (TN, D)  points tile
    c_ref:     (TM, D)  centers tile (A @ B^T -> no host-side transpose)
    pn_ref:    (TN, 1)  ||p||^2          (hoisted, computed once in wrapper)
    cpack_ref: (3,  TM) rows = [||c||^2, gate=sigmoid(amp), coef=-0.5/(scale+eps)^2]
    """
    cross = lax.dot_general(p_ref[...], c_ref[...], _NT_DIMS,
                            preferred_element_type=jnp.float32)       # MXU (TN, TM)
    sq_dist = jnp.maximum(pn_ref[...] + cpack_ref[0:1, :] - 2.0 * cross, 0.0)
    out = cpack_ref[1:2, :] * jnp.exp(cpack_ref[2:3, :] * sq_dist)    # gate*exp(coef*d2)
    out_ref[...] = out.astype(out_ref.dtype)      # compute in f32, downcast only at store


def _splats_on_rows_kernel(c_ref, p_ref, spack_ref, pn_ref, out_ref):
    """out[splat, point]: splats on sublanes (pad to 8, not 128), points on lanes.

    Used when the splat count is tiny: avoids padding the lane axis to 128.
    """
    cross = lax.dot_general(c_ref[...], p_ref[...], _NT_DIMS,
                            preferred_element_type=jnp.float32)       # MXU (TM, TN)
    sq_dist = jnp.maximum(spack_ref[:, 0:1] + pn_ref[...] - 2.0 * cross, 0.0)
    out = spack_ref[:, 1:2] * jnp.exp(spack_ref[:, 2:3] * sq_dist)
    out_ref[...] = out.astype(out_ref.dtype)


def _axis_tile(size: int, tile: int, align: int):
    """(padded_size, block) for one tiled output axis.

    If the axis fits in one tile the block spans the full (unpadded) axis —
    exempt from the (8,128) rule, so no host-side padding copy is made.
    Otherwise the block is an `align` multiple and the axis pads up to it.
    """
    if size <= tile:
        return size, size
    tile = max(align, (tile // align) * align)
    return _round_up(size, tile), tile


def _clamp_tiles(tile_a, tile_b, d, aux_a, aux_b, out_bytes,
                 budget_bytes=12 * 1024 * 1024):
    """Shrink tiles so the double-buffered per-step VMEM footprint stays under
    budget (fits v5e/v6e default scoped VMEM and v7x's smaller 64 MiB VMEM)."""
    def footprint(ta, tb):
        return (2 * 4 * (ta * d + tb * d + ta * aux_a + aux_b * tb)
                + 2 * out_bytes * ta * tb)
    while footprint(tile_a, tile_b) > budget_bytes:
        if tile_a >= tile_b and tile_a > 8:
            tile_a //= 2
        elif tile_b > 128:
            tile_b //= 2
        elif tile_a > 8:
            tile_a //= 2
        else:
            break  # TODO(synk): tile the contraction axis D (k-grid + accumulator) for huge D.
    return tile_a, tile_b


def _pad2d(x, rows, cols):
    if x.shape == (rows, cols):
        return x                                   # no extra HBM pass when unpadded
    return jnp.zeros((rows, cols), x.dtype).at[: x.shape[0], : x.shape[1]].set(x)


def _pairwise_pallas_call(kernel, a, b, a_aux, b_aux, tile_a, tile_b, out_dtype):
    """out[i, j] = f(a[i], b[j]); a rows -> output sublanes, b rows -> output lanes."""
    ra, d = a.shape
    rb = b.shape[0]
    ka = a_aux.shape[1]
    kb = b_aux.shape[0]

    a_pad, ta = _axis_tile(ra, tile_a, 8)          # sublane axis
    b_pad, tb = _axis_tile(rb, tile_b, 128)        # lane axis

    a = _pad2d(a, a_pad, d)
    b = _pad2d(b, b_pad, d)
    a_aux = _pad2d(a_aux, a_pad, ka)
    b_aux = _pad2d(b_aux, kb, b_pad)

    out_bytes = np.dtype(out_dtype).itemsize
    grid = (a_pad // ta, b_pad // tb)

    out = pl.pallas_call(
        kernel,
        out_shape=jax.ShapeDtypeStruct((a_pad, b_pad), out_dtype),
        grid=grid,
        in_specs=[
            pl.BlockSpec((ta, d), lambda i, j: (i, 0)),    # a rows   (full, unpadded D)
            pl.BlockSpec((tb, d), lambda i, j: (j, 0)),    # b rows
            pl.BlockSpec((ta, ka), lambda i, j: (i, 0)),   # per-row aux
            pl.BlockSpec((kb, tb), lambda i, j: (0, j)),   # per-col aux
        ],
        out_specs=pl.BlockSpec((ta, tb), lambda i, j: (i, j)),
        compiler_params=pltpu.CompilerParams(
            dimension_semantics=("parallel", "parallel")),
        cost_estimate=pl.CostEstimate(
            flops=int(2 * a_pad * b_pad * d + 7 * a_pad * b_pad),
            transcendentals=int(a_pad * b_pad),
            bytes_accessed=int(4 * (a_pad * d + b_pad * d + a_pad * ka + kb * b_pad)
                               + out_bytes * a_pad * b_pad),
        ),
    )(a, b, a_aux, b_aux)

    if (a_pad, b_pad) != (ra, rb):
        out = out[:ra, :rb]
    return out


def gaussian_splat_batch(points, centers, log_scales, amplitudes, *,
                         tile_points=512, tile_splats=512,
                         out_dtype=jnp.float32, splats_on_lanes=None):
    """Evaluate all (point, splat) pairs: returns an (N, M) array of responses."""
    points = jnp.asarray(points, jnp.float32)
    centers = jnp.asarray(centers, jnp.float32)
    n, d = points.shape
    m = centers.shape[0]
    log_scales = jnp.broadcast_to(
        jnp.asarray(log_scales, jnp.float32).reshape(-1), (m,))
    amplitudes = jnp.broadcast_to(
        jnp.asarray(amplitudes, jnp.float32).reshape(-1), (m,))

    # Hoisted invariants: computed ONCE here, not once per output tile.
    sq_p = jnp.sum(points * points, axis=-1)                 # (n,)
    sq_c = jnp.sum(centers * centers, axis=-1)               # (m,)
    scale = jnp.exp(log_scales)
    coef = -0.5 / jnp.square(scale + 1e-8)                   # (m,)  -0.5/(scale+eps)^2
    gate = jax.nn.sigmoid(amplitudes)                        # (m,)

    out_bytes = np.dtype(out_dtype).itemsize
    if splats_on_lanes is None:
        # Tiny splat counts don't justify padding the lane axis to 128.
        splats_on_lanes = (m >= 128) or (m >= n)

    if splats_on_lanes:
        ta, tb = _clamp_tiles(min(tile_points, n), min(tile_splats, m), d,
                              aux_a=1, aux_b=3, out_bytes=out_bytes)
        cpack = jnp.stack([sq_c, gate, coef], axis=0)        # (3, m)
        return _pairwise_pallas_call(_splats_on_lanes_kernel, points, centers,
                                     sq_p[:, None], cpack, ta, tb, out_dtype)

    # Few splats: splats on sublanes, points on lanes; one cheap transpose at the end.
    ta, tb = _clamp_tiles(min(tile_splats, m), min(tile_points, n), d,
                          aux_a=3, aux_b=1, out_bytes=out_bytes)
    spack = jnp.stack([sq_c, gate, coef], axis=1)            # (m, 3)
    out_t = _pairwise_pallas_call(_splats_on_rows_kernel, centers, points,
                                  spack, sq_p[None, :], ta, tb, out_dtype)
    return out_t.T


# ---------------------------------------------------------------------------
# References (mirror the torch forward exactly).
# ---------------------------------------------------------------------------
def _reference(point, center, log_scale, amplitude):
    distance = jnp.sqrt(jnp.sum((point - center) ** 2))
    scale = jnp.exp(log_scale)
    return jax.nn.sigmoid(amplitude) * jnp.exp(-0.5 * (distance / (scale + 1e-8)) ** 2)


def _reference_batch(points, centers, log_scales, amplitudes):
    d2 = jnp.sum((points[:, None, :] - centers[None, :, :]) ** 2, axis=-1)
    scales = jnp.exp(log_scales)[None, :]
    gates = jax.nn.sigmoid(amplitudes)[None, :]
    return gates * jnp.exp(-0.5 * d2 / (scales + 1e-8) ** 2)


if __name__ == "__main__":
    embedding_dim = 64
    key = jax.random.PRNGKey(0)
    k_point, k_center, k_pts, k_ctrs, k_ls, k_amp, k_big = jax.random.split(key, 7)

    # --- module-exact single point / single splat (matches nn.Module init) ---
    center = jax.random.normal(k_center, (embedding_dim,), dtype=jnp.float32)
    log_scale = jnp.float32(0.0)
    amplitude = jnp.float32(1.0)
    point = center + 0.15 * jax.random.normal(k_point, (embedding_dim,), dtype=jnp.float32)

    out = jax.block_until_ready(standard_gaussian_splat(point, center, log_scale, amplitude))
    ref = _reference(point, center, log_scale, amplitude)
    assert jnp.allclose(out, ref, rtol=1e-5, atol=1e-6), (out, ref)

    # --- batched: 64 points x 16 splats (few-splat path: splats on sublanes) ---
    n_points, n_splats = 64, 16
    points = 0.15 * jax.random.normal(k_pts, (n_points, embedding_dim), dtype=jnp.float32)
    centers = 0.15 * jax.random.normal(k_ctrs, (n_splats, embedding_dim), dtype=jnp.float32)
    log_scales = 0.1 * jax.random.normal(k_ls, (n_splats,), dtype=jnp.float32)
    amplitudes = 1.0 + 0.1 * jax.random.normal(k_amp, (n_splats,), dtype=jnp.float32)
    refs = _reference_batch(points, centers, log_scales, amplitudes)

    outs = jax.block_until_ready(
        gaussian_splat_batch(points, centers, log_scales, amplitudes))
    assert outs.shape == (n_points, n_splats)
    assert jnp.allclose(outs, refs, rtol=1e-4, atol=1e-5), \
        float(jnp.max(jnp.abs(outs - refs)))

    # --- same data through the splats-on-lanes kernel (forced, exercises both paths) ---
    outs_l = jax.block_until_ready(
        gaussian_splat_batch(points, centers, log_scales, amplitudes,
                             splats_on_lanes=True))
    assert jnp.allclose(outs_l, refs, rtol=1e-4, atol=1e-5)

    # --- bf16 output option (halved writeback for bandwidth-bound v5e/v6e) ---
    outs_bf16 = jax.block_until_ready(
        gaussian_splat_batch(points, centers, log_scales, amplitudes,
                             out_dtype=jnp.bfloat16))
    assert outs_bf16.dtype == jnp.bfloat16
    assert jnp.allclose(outs_bf16.astype(jnp.float32), refs, rtol=2e-2, atol=2e-2)

    # --- a case that actually tiles + pads the point axis (grid > 1) ---
    nb, mb, db = 600, 200, 40
    kp2, kc2, kl2, ka2 = jax.random.split(k_big, 4)
    pts_b = 0.3 * jax.random.normal(kp2, (nb, db), dtype=jnp.float32)
    ctr_b = 0.3 * jax.random.normal(kc2, (mb, db), dtype=jnp.float32)
    ls_b = 0.2 * jax.random.normal(kl2, (mb,), dtype=jnp.float32)
    amp_b = 0.5 * jax.random.normal(ka2, (mb,), dtype=jnp.float32)
    outs_b = jax.block_until_ready(
        gaussian_splat_batch(pts_b, ctr_b, ls_b, amp_b,
                             tile_points=512, tile_splats=512))
    refs_b = _reference_batch(pts_b, ctr_b, ls_b, amp_b)
    assert outs_b.shape == (nb, mb)
    assert jnp.allclose(outs_b, refs_b, rtol=1e-4, atol=1e-5), \
        float(jnp.max(jnp.abs(outs_b - refs_b)))

    print("KERNEL_OK")
</pallas_src>

<mosaic_0001>
module attributes {stable_mosaic.version = 11 : i64} {
  func.func @_splat_scalar_kernel(%arg0: memref<2xf32, #tpu.memory_space<smem>>, %arg1: memref<2x64xf32, #tpu.memory_space<vmem>>, %arg2: memref<1x1xf32, #tpu.memory_space<vmem>>) attributes {dimension_semantics = [], scalar_prefetch = 0 : i64, scratch_operands = 0 : i64, tpu.core_type = #tpu.core_type<tc>} {
    %c0 = arith.constant 0 : index
    %c0_0 = arith.constant 0 : index
    %0 = vector.load %arg1[%c0, %c0_0] : memref<2x64xf32, #tpu.memory_space<vmem>>, vector<1x64xf32>
    %c1 = arith.constant 1 : index
    %c0_1 = arith.constant 0 : index
    %1 = vector.load %arg1[%c1, %c0_1] : memref<2x64xf32, #tpu.memory_space<vmem>>, vector<1x64xf32>
    %2 = arith.subf %0, %1 : vector<1x64xf32>
    %3 = arith.mulf %2, %2 : vector<1x64xf32>
    %4 = vector.shape_cast %3 : vector<1x64xf32> to vector<1x1x64xf32>
    %cst = arith.constant dense<0.000000e+00> : vector<1xf32>
    %5 = vector.multi_reduction <add>, %4, %cst [1, 2] : vector<1x1x64xf32> to vector<1xf32>
    %6 = vector.shape_cast %5 : vector<1xf32> to vector<1x1x1xf32>
    %7 = vector.extract %6[0, 0, 0] : f32 from vector<1x1x1xf32>
    %8 = vector.broadcast %7 : f32 to vector<1x1xf32>
    %c0_2 = arith.constant 0 : index
    %9 = memref.load %arg0[%c0_2] : memref<2xf32, #tpu.memory_space<smem>>
    %10 = math.exp %9 : f32
    %cst_3 = arith.constant 9.99999993E-9 : f32
    %11 = arith.addf %10, %cst_3 : f32
    %cst_4 = arith.constant 1.000000e+00 : f32
    %12 = arith.divf %cst_4, %11 : f32
    %c1_5 = arith.constant 1 : index
    %13 = memref.load %arg0[%c1_5] : memref<2xf32, #tpu.memory_space<smem>>
    %cst_6 = arith.constant 0.000000e+00 : f32
    %14 = arith.subf %cst_6, %13 : f32
    %15 = math.exp %14 : f32
    %cst_7 = arith.constant 1.000000e+00 : f32
    %16 = arith.addf %cst_7, %15 : f32
    %cst_8 = arith.constant 1.000000e+00 : f32
    %17 = arith.divf %cst_8, %16 : f32
    %cst_9 = arith.constant -5.000000e-01 : f32
    %18 = vector.broadcast %cst_9 : f32 to vector<1x1xf32>
    %19 = arith.mulf %18, %8 : vector<1x1xf32>
    %20 = arith.mulf %12, %12 : f32
    %21 = vector.broadcast %20 : f32 to vector<1x1xf32>
    %22 = arith.mulf %19, %21 : vector<1x1xf32>
    %23 = math.exp %22 : vector<1x1xf32>
    %24 = vector.broadcast %17 : f32 to vector<1x1xf32>
    %25 = arith.mulf %24, %23 : vector<1x1xf32>
    %c0_10 = arith.constant 0 : index
    %c0_11 = arith.constant 0 : index
    %26 = vector.load %arg2[%c0_10, %c0_11] : memref<1x1xf32, #tpu.memory_space<vmem>>, vector<1x1xf32>
    tpu.vector_store %arg2[%c0_10, %c0_11], %25 {strides = array<i32>} : memref<1x1xf32, #tpu.memory_space<vmem>>, vector<1x1xf32>,
    return
  }
}

</mosaic_0001>

<bundles_post_ra>
// kernel: tpu_custom_call.1
= control target key start
LH: loop header
LB: loop body
LE: loop exit
PB: predicated region body
PF: predicated region fallthrough
CT: control target
= control target key end

     0   :  { %7 = vsyncpa [#allocation5], 0  ;;  %s248_s0 = inlined_call_operand.hbm [shape: f32[2], index: 0, kind: input, shape index: {}]   ;;  %s249_s1 = inlined_call_operand.hbm [shape: f32[2,64], index: 1, kind: input, shape index: {}]   ;;  %s250_s2 = inlined_call_operand.hbm [shape: f32[1,1], index: 2, kind: output, shape index: {}]  }
   0x1   :  { %8 = vsyncpa [#allocation3], 0 }
   0x2   :  { %9 = vsyncpa [#allocation4], 0  ;;  %s15_s11 = sshll.u32 %s248_s0, 4  ;;  %s24_s14 = sshll.u32 %s249_s1, 4  ;;  %s16_s11 = int_to_ptr.hbm [resolvable:$true] %s15_s11  ;;  %s25_s14 = int_to_ptr.hbm [resolvable:$true] %s24_s14 }
   0x3   :  { %s218_s15 = smov [#allocation2]   ;;  %s219_s16 = smov [#allocation6]  }
   0x4   :  { %18 = dma.hbm_to_smem %s16_s11, 16, %s218_s15, [#allocation5]  }
   0x5   :  { %s26_s17 = sshll.u32 %s219_s16, 4  ;;  %s27_s17 = int_to_ptr.vmem [resolvable:$true] %s26_s17 }
   0x6   :  { %29 = dma.hbm_to_vmem [thread:$0]  %s25_s14, 32, %s27_s17, [#allocation3]  }
   0x7   :  { %212 = dma.done.wait [#allocation5], 16  }
   0x8   :  { %213 = vsyncadd [#allocation5], 4294967280 }
   0x9   :  { %214 = dma.done.wait [#allocation3], 32  }
   0xa   :  { %215 = vsyncadd [#allocation3], 4294967264 }
   0xb   :  { %38 = sfence }
   0xc   :  { %v39_v0 = vld [vmem:[#allocation6] sm:$0x1]  ;;  %v40_v1 = vld [vmem:[#allocation6 + $0x1] sm:$0x1]  ;;  %vm43_vm0 = vcmask 516096   ;;  %s55_s0 = sld [smem:[#allocation2]] }
   0xd   :  { %v41_v2 = vsub.f32 %v39_v0, %v40_v1  ;;  %s128_s1 = sld [smem:[#allocation2 + $0x1]]  ;;  %s220_s26 = smov [#allocation7]   ;;  %vm108_vm9 = vcmask 0  }
   0xe   :  { %s115_s27 = sshll.u32 %s220_s26, 4  ;;  %s117_s30 = sshll.u32 %s250_s2, 4  ;;  %s116_s27 = int_to_ptr.vmem [resolvable:$true] %s115_s27  ;;  %s118_s30 = int_to_ptr.hbm [resolvable:$true] %s117_s30 }
   0xf   :  { %v42_v3 = vmul.f32 %v41_v2, %v41_v2 }
  0x11   :  { %v44_v4 = vsel %vm43_vm0, %v42_v3, 0.0 }
  0x12   :  { %45 = vadd.xlane.f32.xlu0 %v44_v4  ;;  %v56_v5 = vstv %s55_s0 }
  0x13   :  { %v57_v8 = vmul.f32 1.442695, %v56_v5  ;;  %s78_s21 = ssub.f32 0.0, %s128_s1 }
  0x15   :  { %142 = vpow2.f32 %v57_v8  ;;  %v79_v16 = vstv %s78_s21 }
  0x16   :  { %v80_v17 = vmul.f32 1.442695, %v79_v16 }
  0x1b   :  { %v143_v13 = vpop.eup %142 }
  0x85   :  { %v46_v6 = vpop.xlane.xlu0 %45 }
  0x86   :  { %v47_v7 = vrot.slane %v46_v6, 4 }
  0x88   :  { %v48_v9 = vadd.f32 %v47_v7, %v46_v6 }
  0x8a   :  { %v49_v10 = vrot.slane %v48_v9, 2 }
  0x8c   :  { %v50_v11 = vadd.f32 %v49_v10, %v48_v9 }
  0x8e   :  { %v51_v12 = vrot.slane %v50_v11, 1 }
  0x90   :  { %v52_v14 = vadd.f32 %v51_v12, %v50_v11 }
  0x92   :  { %129 = vpush %v52_v14 }
  0x93   :  { %131 = vpush %v143_v13 }
  0xc3   :  { %s242_s18 = spop %129 }
  0xc4   :  { %s132_s19 = spop %131  ;;  %v54_v40 = vstv %s242_s18 }
  0xc5   :  { %s60_s20 = sadd.f32 1e-08, %s132_s19  ;;  %v100_v42 = vmul.f32 -0.5, %v54_v40 }
  0xc7   :  { %v61_v15 = vstv %s60_s20 }
  0xc8   :  { %144 = vrcp.f32 %v61_v15  ;;  %v73_v21 = vand.u32 2147483648, %v61_v15  ;;  %v71_v23 = vand.u32 2147483647, %v61_v15  ;;  %vm67_vm2 = vweird.f32 %v61_v15 }
  0xc9   :  { %146 = vpow2.f32 %v80_v17 }
  0xca   :  { %v74_v25 = vor.u32 1.1754944e-38, %v73_v21  ;;  %vm72_vm4 = vcmp.eq.f32.partialorder %v71_v23, 8.507059e+37 }
  0xce   :  { %v145_v18 = vpop.eup %144 }
  0xcf   :  { %v63_v19 = vmul.f32 %v145_v18, %v61_v15  ;;  %vm68_vm1 = vweird.f32 %v145_v18  ;;  %v147_v26 = vpop.eup %146 }
  0xd0   :  { %vm69_vm3 = vmor %vm67_vm2, %vm68_vm1 }
  0xd1   :  { %v64_v20 = vsub.f32 1.0, %v63_v19 }
  0xd3   :  { %v65_v22 = vmul.f32 %v145_v18, %v64_v20 }
  0xd5   :  { %v66_v24 = vadd.f32 %v145_v18, %v65_v22 }
  0xd7   :  { %v70_v27 = vsel %vm69_vm3, %v145_v18, %v66_v24 }
  0xd8   :  { %v75_v28 = vsel %vm72_vm4, %v74_v25, %v70_v27 }
  0xd9   :  { %133 = vpush %v75_v28 }
  0xda   :  { %135 = vpush %v147_v26 }
 0x10a   :  { %s134_s22 = spop %133 }
 0x10b   :  { %s136_s23 = spop %135  ;;  %s101_s25 = smul.f32 %s134_s22, %s134_s22 }
 0x10c   :  { %s83_s24 = sadd.f32 1.0, %s136_s23 }
 0x10d   :  { %v102_v41 = vstv %s101_s25 }
 0x10e   :  { %v84_v29 = vstv %s83_s24  ;;  %v103_v43 = vmul.f32 %v102_v41, %v100_v42 }
 0x10f   :  { %148 = vrcp.f32 %v84_v29  ;;  %v96_v33 = vand.u32 2147483648, %v84_v29  ;;  %v94_v35 = vand.u32 2147483647, %v84_v29  ;;  %vm90_vm6 = vweird.f32 %v84_v29 }
 0x110   :  { %v104_v44 = vmul.f32 1.442695, %v103_v43 }
 0x111   :  { %v97_v37 = vor.u32 1.1754944e-38, %v96_v33  ;;  %vm95_vm8 = vcmp.eq.f32.partialorder %v94_v35, 8.507059e+37 }
 0x112   :  { %150 = vpow2.f32 %v104_v44 }
 0x115   :  { %v149_v30 = vpop.eup %148 }
 0x116   :  { %v86_v31 = vmul.f32 %v149_v30, %v84_v29  ;;  %vm91_vm5 = vweird.f32 %v149_v30 }
 0x117   :  { %vm92_vm7 = vmor %vm90_vm6, %vm91_vm5 }
 0x118   :  { %v87_v32 = vsub.f32 1.0, %v86_v31  ;;  %v151_v45 = vpop.eup %150 }
 0x11a   :  { %v88_v34 = vmul.f32 %v149_v30, %v87_v32 }
 0x11c   :  { %v89_v36 = vadd.f32 %v149_v30, %v88_v34 }
 0x11e   :  { %v93_v38 = vsel %vm92_vm7, %v149_v30, %v89_v36 }
 0x11f   :  { %v98_v39 = vsel %vm95_vm8, %v97_v37, %v93_v38 }
 0x120   :  { %137 = vpush %v98_v39 }
 0x151   :  { %s138_s3 = spop %137 }
 0x152   :  { %v106_v46 = vstv %s138_s3 }
 0x153   :  { %v107_v47 = vmul.f32 %v151_v45, %v106_v46 }
 0x155   :  { %109 = vst.msk [vmem:[#allocation7] sm:$0x1] %vm108_vm9, %v107_v47 }
 0x156   :  { %120 = dma.vmem_to_hbm [thread:$0]  %s116_s27, 16, %s118_s30, [#allocation4]  }
 0x157   :  { %216 = dma.done.wait [#allocation4], 16  }
 0x158   :  { %217 = vsyncadd [#allocation4], 4294967280 }
 0x159   :  { %125 = vsyncpa [#allocation3], 1 }
 0x15a   :  { %126 = vsyncpa [#allocation4], 1 }
 0x15b   :  { %127 = vsyncpa [#allocation5], 1 }

</bundles_post_ra>
